<compile_context>
chip_gen: v7x
topology: tpu7x:2x2x1
jax: 0.10.0
libtpu: 0.0.40
codegen_flags: <defaults>
</compile_context>

<pallas_src>
import functools

import jax
import jax.numpy as jnp
from jax.experimental import pallas as pl
from jax.experimental.pallas import tpu as pltpu

LANE = 128        # lane width; every packed block is one full lane-tile wide.
VALUE_COL = 127   # lane column holding the value-stream output inside the head block.


def dueling_q_kernel(x_ref, w_ref, b_ref, out_ref, *, action_size):
    """Fused forward, single invocation, all operands lane-dense.

    x_ref : (B, 128)      state, zero-padded past state_size
    w_ref : (128, 3*128)  packed weights; lane blocks:
              [0:128]    W1    (pad(state_size)->pad(fc1))
              [128:256]  Wfus  (pad(fc1)->pad(2*fc3))   = W2.T @ [wv1.T | wa1.T]
              [256:384]  Whead (pad(2*fc3)->pad(head))  adv in cols 0..A-1, value in col 127
    b_ref : (1, 3*128)    packed biases at the same lane offsets
    out_ref: (B, 128)     q-values in cols 0..A-1, zeros elsewhere
    """
    x = x_ref[...]                                                      # (B, 128)

    # fc1 + ReLU
    h1 = jnp.maximum(
        jnp.dot(x, w_ref[:, 0:LANE], preferred_element_type=jnp.float32)
        + b_ref[:, 0:LANE],
        0.0,
    )                                                                   # (B, 128)

    # fc2 folded into the fused value/advantage first layers (+ ReLU)
    hs = jnp.maximum(
        jnp.dot(h1, w_ref[:, LANE:2 * LANE], preferred_element_type=jnp.float32)
        + b_ref[:, LANE:2 * LANE],
        0.0,
    )                                                                   # (B, 128)

    # Fused heads: cols 0..A-1 = advantages, col 127 = value, rest zero.
    heads = (
        jnp.dot(hs, w_ref[:, 2 * LANE:3 * LANE], preferred_element_type=jnp.float32)
        + b_ref[:, 2 * LANE:3 * LANE]
    )                                                                   # (B, 128)

    batch = heads.shape[0]
    col = jax.lax.broadcasted_iota(jnp.int32, heads.shape, 1)
    adv_mask = col < action_size

    # PyTorch: advantages.mean() is a GLOBAL mean (over batch AND actions).
    adv_mean = jnp.sum(jnp.where(adv_mask, heads, 0.0)) * (
        1.0 / (batch * action_size)
    )
    # Per-sample value broadcast across lanes (masked cross-lane reduce, no narrow slice).
    val = jnp.sum(jnp.where(col == VALUE_COL, heads, 0.0), axis=-1, keepdims=True)

    out_ref[...] = jnp.where(adv_mask, heads + (val - adv_mean), 0.0)


def prepare_params(params):
    """One-time packing of PyTorch-convention params into the kernel layout.

    params[w*] are (out, in), params[b*] are (out,).  Call ONCE, not per forward.
    """
    state_size = params["w1"].shape[1]
    fc1 = params["w1"].shape[0]
    fc3 = params["wv1"].shape[0]
    action_size = params["wa2"].shape[0]

    assert state_size <= LANE and fc1 <= LANE and 2 * fc3 <= LANE
    assert action_size < VALUE_COL, "value column must not collide with advantages"

    # Fused stream-1 weights: [wv1.T | wa1.T]  -> (fc2, 2*fc3)
    ws1 = jnp.concatenate([params["wv1"].T, params["wa1"].T], axis=1)
    bs1 = jnp.concatenate([params["bv1"], params["ba1"]])

    # Fold the activation-free fc2 layer:  feat @ ws1 + bs1 == h1 @ wfused + bfused
    wfused = params["w2"].T @ ws1                    # (fc1, 2*fc3)
    bfused = params["b2"] @ ws1 + bs1                # (2*fc3,)

    # Packed blobs: contraction dim padded to a full 128 rows, lane blocks at 0/128/256.
    wblob = jnp.zeros((LANE, 3 * LANE), jnp.float32)
    bblob = jnp.zeros((1, 3 * LANE), jnp.float32)

    # Block 0: W1
    wblob = wblob.at[:state_size, 0:fc1].set(params["w1"].T)
    bblob = bblob.at[0, 0:fc1].set(params["b1"])
    # Block 1: fused fc2 + stream-1
    wblob = wblob.at[:fc1, LANE:LANE + 2 * fc3].set(wfused)
    bblob = bblob.at[0, LANE:LANE + 2 * fc3].set(bfused)
    # Block 2: heads — advantages in cols 0..A-1, value in col VALUE_COL.
    wblob = wblob.at[fc3:2 * fc3, 2 * LANE:2 * LANE + action_size].set(params["wa2"].T)
    bblob = bblob.at[0, 2 * LANE:2 * LANE + action_size].set(params["ba2"])
    wblob = wblob.at[:fc3, 2 * LANE + VALUE_COL:2 * LANE + VALUE_COL + 1].set(params["wv2"].T)
    bblob = bblob.at[0, 2 * LANE + VALUE_COL].set(params["bv2"][0])

    dims = dict(state_size=int(state_size), action_size=int(action_size))
    return {"wblob": wblob, "bblob": bblob, "dims": dims}


def make_forward(dims):
    """Build a jitted forward taking (x, wblob, bblob) -> (B, action_size) q-values."""
    state_size = dims["state_size"]
    action_size = dims["action_size"]
    kernel = functools.partial(dueling_q_kernel, action_size=action_size)
    vmem = pl.BlockSpec(memory_space=pltpu.MemorySpace.VMEM)

    @jax.jit
    def forward(x, wblob, bblob):
        B = x.shape[0]
        # Layout plumbing: lane-dense input (zero-pad past state_size).
        x_pad = jnp.zeros((B, LANE), jnp.float32).at[:, :state_size].set(
            x.astype(jnp.float32))

        cost = pl.CostEstimate(
            flops=2 * B * LANE * LANE * 3,
            transcendentals=0,
            bytes_accessed=(x_pad.size + wblob.size + bblob.size + B * LANE) * 4,
        )
        q_pad = pl.pallas_call(
            kernel,
            out_shape=jax.ShapeDtypeStruct((B, LANE), jnp.float32),
            in_specs=[vmem, vmem, vmem],
            out_specs=vmem,
            cost_estimate=cost,
        )(x_pad, wblob, bblob)
        # Lane-dense store in-kernel; the narrow slice lives in the wrapper (free plumbing).
        return q_pad[:, :action_size]

    return forward


def init_linear(key, out_features, in_features):
    """Deterministic init matching nn.Linear default: U(-1/sqrt(fan_in), +1/sqrt(fan_in))."""
    kw, kb = jax.random.split(key)
    bound = 1.0 / jnp.sqrt(jnp.float32(in_features))
    w = jax.random.uniform(kw, (out_features, in_features), jnp.float32, -bound, bound)
    b = jax.random.uniform(kb, (out_features,), jnp.float32, -bound, bound)
    return w, b


def reference_forward(x, params):
    """Plain-JAX reference mirroring the PyTorch forward exactly."""
    h1 = jnp.maximum(x @ params["w1"].T + params["b1"], 0.0)
    feat = h1 @ params["w2"].T + params["b2"]
    hv = jnp.maximum(feat @ params["wv1"].T + params["bv1"], 0.0)
    values = hv @ params["wv2"].T + params["bv2"]
    ha = jnp.maximum(feat @ params["wa1"].T + params["ba1"], 0.0)
    advantages = ha @ params["wa2"].T + params["ba2"]
    return values + (advantages - jnp.mean(advantages))


if __name__ == "__main__":
    # Small shapes consistent with the module defaults: state is a flat vector per sample.
    batch = 8
    state_size = 16
    action_size = 4
    fc1_units, fc2_units, fc3_units = 32, 16, 8

    key = jax.random.PRNGKey(0)
    keys = jax.random.split(key, 7)

    w1, b1 = init_linear(keys[0], fc1_units, state_size)
    w2, b2 = init_linear(keys[1], fc2_units, fc1_units)
    wv1, bv1 = init_linear(keys[2], fc3_units, fc2_units)
    wv2, bv2 = init_linear(keys[3], 1, fc3_units)
    wa1, ba1 = init_linear(keys[4], fc3_units, fc2_units)
    wa2, ba2 = init_linear(keys[5], action_size, fc3_units)

    params = dict(
        w1=w1, b1=b1, w2=w2, b2=b2,
        wv1=wv1, bv1=bv1, wv2=wv2, bv2=bv2,
        wa1=wa1, ba1=ba1, wa2=wa2, ba2=ba2,
    )

    # One-time packing (weight fold + lane-dense layout), hoisted out of the per-call path.
    packed = prepare_params(params)
    wblob = jax.block_until_ready(packed["wblob"])
    bblob = jax.block_until_ready(packed["bblob"])
    forward = make_forward(packed["dims"])

    x = jax.random.normal(keys[6], (batch, state_size), jnp.float32)

    qvals = forward(x, wblob, bblob)
    qvals = jax.block_until_ready(qvals)

    ref = reference_forward(x, params)
    assert qvals.shape == (batch, action_size)
    # Folding fc2 into the stream-1 weights reorders f32 rounding slightly; tolerance
    # covers that while still verifying bit-level-close parity with the reference.
    assert jnp.allclose(qvals, ref, atol=1e-4, rtol=1e-4), "mismatch vs reference"

    print("KERNEL_OK")
</pallas_src>

<mosaic_0001>
module attributes {stable_mosaic.version = 11 : i64} {
  func.func @dueling_q_kernel(%arg0: memref<8x128xf32, #tpu.memory_space<vmem>>, %arg1: memref<128x384xf32, #tpu.memory_space<vmem>>, %arg2: memref<1x384xf32, #tpu.memory_space<vmem>>, %arg3: memref<8x128xf32, #tpu.memory_space<vmem>>) attributes {dimension_semantics = [], scalar_prefetch = 0 : i64, scratch_operands = 0 : i64, tpu.core_type = #tpu.core_type<tc>} {
    %c0 = arith.constant 0 : index
    %c0_0 = arith.constant 0 : index
    %0 = vector.load %arg0[%c0, %c0_0] : memref<8x128xf32, #tpu.memory_space<vmem>>, vector<8x128xf32>
    %c0_1 = arith.constant 0 : index
    %c0_2 = arith.constant 0 : index
    %1 = vector.load %arg1[%c0_1, %c0_2] : memref<128x384xf32, #tpu.memory_space<vmem>>, vector<128x128xf32>
    %cst = arith.constant dense<0.000000e+00> : vector<8x128xf32>
    %2 = tpu.matmul %0, %1, %cst {dimension_numbers = #tpu.dot_dimension_numbers<[1], [0], [0], [1], [0, 0, 1, 1], [], []>} : vector<8x128xf32>, vector<128x128xf32>, vector<8x128xf32> -> vector<8x128xf32>
    %c0_3 = arith.constant 0 : index
    %c0_4 = arith.constant 0 : index
    %3 = vector.load %arg2[%c0_3, %c0_4] : memref<1x384xf32, #tpu.memory_space<vmem>>, vector<1x128xf32>
    %4 = vector.broadcast %3 : vector<1x128xf32> to vector<8x128xf32>
    %5 = arith.addf %2, %4 : vector<8x128xf32>
    %cst_5 = arith.constant 0.000000e+00 : f32
    %6 = vector.broadcast %cst_5 : f32 to vector<8x128xf32>
    %7 = arith.maximumf %5, %6 : vector<8x128xf32>
    %c0_6 = arith.constant 0 : index
    %c128 = arith.constant 128 : index
    %8 = vector.load %arg1[%c0_6, %c128] : memref<128x384xf32, #tpu.memory_space<vmem>>, vector<128x128xf32>
    %cst_7 = arith.constant dense<0.000000e+00> : vector<8x128xf32>
    %9 = tpu.matmul %7, %8, %cst_7 {dimension_numbers = #tpu.dot_dimension_numbers<[1], [0], [0], [1], [0, 0, 1, 1], [], []>} : vector<8x128xf32>, vector<128x128xf32>, vector<8x128xf32> -> vector<8x128xf32>
    %c0_8 = arith.constant 0 : index
    %c128_9 = arith.constant 128 : index
    %10 = vector.load %arg2[%c0_8, %c128_9] : memref<1x384xf32, #tpu.memory_space<vmem>>, vector<1x128xf32>
    %11 = vector.broadcast %10 : vector<1x128xf32> to vector<8x128xf32>
    %12 = arith.addf %9, %11 : vector<8x128xf32>
    %cst_10 = arith.constant 0.000000e+00 : f32
    %13 = vector.broadcast %cst_10 : f32 to vector<8x128xf32>
    %14 = arith.maximumf %12, %13 : vector<8x128xf32>
    %c0_11 = arith.constant 0 : index
    %c256 = arith.constant 256 : index
    %15 = vector.load %arg1[%c0_11, %c256] : memref<128x384xf32, #tpu.memory_space<vmem>>, vector<128x128xf32>
    %cst_12 = arith.constant dense<0.000000e+00> : vector<8x128xf32>
    %16 = tpu.matmul %14, %15, %cst_12 {dimension_numbers = #tpu.dot_dimension_numbers<[1], [0], [0], [1], [0, 0, 1, 1], [], []>} : vector<8x128xf32>, vector<128x128xf32>, vector<8x128xf32> -> vector<8x128xf32>
    %c0_13 = arith.constant 0 : index
    %c256_14 = arith.constant 256 : index
    %17 = vector.load %arg2[%c0_13, %c256_14] : memref<1x384xf32, #tpu.memory_space<vmem>>, vector<1x128xf32>
    %18 = vector.broadcast %17 : vector<1x128xf32> to vector<8x128xf32>
    %19 = arith.addf %16, %18 : vector<8x128xf32>
    %20 = tpu.iota {dimensions = array<i32: 1>} : vector<8x128xi32>
    %c4_i32 = arith.constant 4 : i32
    %21 = vector.broadcast %c4_i32 : i32 to vector<8x128xi32>
    %22 = arith.cmpi slt, %20, %21 : vector<8x128xi32>
    %cst_15 = arith.constant 0.000000e+00 : f32
    %23 = vector.broadcast %cst_15 : f32 to vector<8x128xf32>
    %24 = arith.select %22, %19, %23 : vector<8x128xi1>, vector<8x128xf32>
    %25 = vector.shape_cast %24 : vector<8x128xf32> to vector<1x8x128xf32>
    %cst_16 = arith.constant dense<0.000000e+00> : vector<1xf32>
    %26 = vector.multi_reduction <add>, %25, %cst_16 [1, 2] : vector<1x8x128xf32> to vector<1xf32>
    %27 = vector.shape_cast %26 : vector<1xf32> to vector<1x1x1xf32>
    %28 = vector.extract %27[0, 0, 0] : f32 from vector<1x1x1xf32>
    %cst_17 = arith.constant 3.125000e-02 : f32
    %29 = arith.mulf %28, %cst_17 : f32
    %c127_i32 = arith.constant 127 : i32
    %30 = vector.broadcast %c127_i32 : i32 to vector<8x128xi32>
    %31 = arith.cmpi eq, %20, %30 : vector<8x128xi32>
    %cst_18 = arith.constant 0.000000e+00 : f32
    %32 = vector.broadcast %cst_18 : f32 to vector<8x128xf32>
    %33 = arith.select %31, %19, %32 : vector<8x128xi1>, vector<8x128xf32>
    %cst_19 = arith.constant dense<0.000000e+00> : vector<8xf32>
    %34 = vector.multi_reduction <add>, %33, %cst_19 [1] : vector<8x128xf32> to vector<8xf32>
    %35 = vector.shape_cast %34 : vector<8xf32> to vector<8x1xf32>
    %36 = vector.broadcast %29 : f32 to vector<8x1xf32>
    %37 = arith.subf %35, %36 : vector<8x1xf32>
    %38 = vector.broadcast %37 : vector<8x1xf32> to vector<8x128xf32>
    %39 = arith.addf %19, %38 : vector<8x128xf32>
    %cst_20 = arith.constant 0.000000e+00 : f32
    %40 = vector.broadcast %cst_20 : f32 to vector<8x128xf32>
    %41 = arith.select %22, %39, %40 : vector<8x128xi1>, vector<8x128xf32>
    %c0_21 = arith.constant 0 : index
    %c0_22 = arith.constant 0 : index
    %42 = vector.load %arg3[%c0_21, %c0_22] : memref<8x128xf32, #tpu.memory_space<vmem>>, vector<8x128xf32>
    tpu.vector_store %arg3[%c0_21, %c0_22], %41 {strides = array<i32>} : memref<8x128xf32, #tpu.memory_space<vmem>>, vector<8x128xf32>,
    return
  }
}

</mosaic_0001>

<bundles_post_ra>
// kernel: forward.1
= control target key start
LH: loop header
LB: loop body
LE: loop exit
PB: predicated region body
PF: predicated region fallthrough
CT: control target
= control target key end

     0   :  { %8 = vsyncpa [#allocation3], 0  ;;  %s601_s12 = smov [#allocation2]   ;;  %s686_s0 = inlined_call_operand.vmem [shape: f32[8,128], index: 0, kind: input, shape index: {}]   ;;  %s687_s1 = inlined_call_operand.hbm [shape: f32[128,384], index: 1, kind: input, shape index: {}]   ;;  %s688_s2 = inlined_call_operand.vmem [shape: f32[1,384], index: 2, kind: input, shape index: {}]   ;;  %s689_s3 = inlined_call_operand.vmem [shape: f32[8,128], index: 3, kind: output, shape index: {}]  }
   0x1   :  { %s16_s13 = sshll.u32 %s601_s12, 4  ;;  %s577_s16 = scalar_lea.hbm %s687_s1, 6144  ;;  %s17_s13 = int_to_ptr.vmem [resolvable:$true] %s16_s13 }
   0x2   :  { %p578_p0 = scmp.ne.s32.totalorder %s687_s1, %s577_s16  ;;  %p581_p1 = scmp.lt.u32.totalorder %s577_s16, %s687_s1 }
   0x4   :  { %p583_p2 = pnand %p581_p1, %p578_p0 }
   0x6   :  { %586 = shalt.err (!%p583_p2)
}
   0x7   :  { %s587_s21 = scalar_lea.vmem %s17_s13, 6144  ;;  %p592_p4 = scmp.lt.s32.totalorder %s17_s13, %s17_s13 }
   0x8   :  { %p588_p3 = scmp.ne.s32.totalorder %s17_s13, %s587_s21  ;;  %p593_p5 = scmp.lt.s32.totalorder %s587_s21, %s587_s21 }
   0xa   :  { %p594_p6 = por %p593_p5, %p592_p4 }
   0xc   :  { %p595_p7 = pnand %p594_p6, %p588_p3 }
   0xe   :  { %598 = shalt.err (!%p595_p7)
}
   0xf   :  { %s602_s22 = smov 384   ;;  %s603_s23 = smov 24  }
  0x10   :  { %22 = dma.hbm_to_vmem [thread:$0]  %s687_s1, 6144, %s17_s13, [#allocation3], %s602_s22, %s602_s22, %s603_s23  }
  0x11   :  { %599 = dma.done.wait [#allocation3], 6144  }
  0x12   :  { %600 = vsyncadd [#allocation3], 4294961152  ;;  %v604_v0 = vmov 0.0|0.0   ;;  %vm605_vm0 = vmmov 0   ;;  %v606_v1 = vmov 0.0   ;;  %v29_v2 = vld [vmem:[#allocation2] sm:$0xff] }
  0x13   :  { %497 = vmatprep.subr.bf16.mxu0 %v604_v0  ;;  %424 = vmatprep.mubr.msk.f32.mxu0 %vm605_vm0, %v606_v1  ;;  %v30_v3 = vld [vmem:[#allocation2 + $0x18] sm:$0xff]  ;;  %v31_v4 = vld [vmem:[#allocation2 + $0x30] sm:$0xff]  ;;  %v32_v6 = vld [vmem:[#allocation2 + $0x48] sm:$0xff] }
  0x14   :  { %521 = vmatprep.subr.bf16.mxu1 %v604_v0  ;;  %459 = vmatprep.mubr.msk.f32.mxu1 %vm605_vm0, %v606_v1  ;;  %v498_v5 = vpack.c.bf16 %v30_v3, %v29_v2  ;;  %v501_v7 = vpack.c.bf16 %v32_v6, %v31_v4  ;;  %v33_v8 = vld [vmem:[#allocation2 + $0x60] sm:$0xff]  ;;  %v34_v9 = vld [vmem:[#allocation2 + $0x78] sm:$0xff]  ;;  %v123_v10 = vld [vmem:[#allocation2 + $0x8] sm:$0xff] }
  0x15   :  { %v124_v11 = vld [vmem:[#allocation2 + $0x20] sm:$0xff]  ;;  %v125_v12 = vld [vmem:[#allocation2 + $0x38] sm:$0xff]  ;;  %v126_v13 = vld [vmem:[#allocation2 + $0x50] sm:$0xff]  ;;  %v504_v14 = vpack.c.bf16 %v34_v9, %v33_v8 }
  0x16   :  { %499 = vmatpush3.bf16.msra.mxu0 %v498_v5  ;;  %v522_v15 = vpack.c.bf16 %v124_v11, %v123_v10  ;;  %v35_v16 = vld [vmem:[#allocation2 + $0x90] sm:$0xff]  ;;  %v36_v17 = vld [vmem:[#allocation2 + $0xa8] sm:$0xff]  ;;  %v525_v18 = vpack.c.bf16 %v126_v13, %v125_v12  ;;  %v128_v20 = vld [vmem:[#allocation2 + $0x80] sm:$0xff] }
  0x17   :  { %500 = vmatprep.subr.bf16.mxu0 %v604_v0  ;;  %v127_v19 = vld [vmem:[#allocation2 + $0x68] sm:$0xff]  ;;  %v507_v21 = vpack.c.bf16 %v36_v17, %v35_v16  ;;  %v37_v22 = vld [vmem:[#allocation2 + $0xc0] sm:$0xff]  ;;  %v38_v23 = vld [vmem:[#allocation2 + $0xd8] sm:$0xff] }
  0x18   :  { %523 = vmatpush3.bf16.msra.mxu1 %v522_v15  ;;  %v528_v24 = vpack.c.bf16 %v128_v20, %v127_v19  ;;  %v129_v25 = vld [vmem:[#allocation2 + $0x98] sm:$0xff]  ;;  %v130_v26 = vld [vmem:[#allocation2 + $0xb0] sm:$0xff]  ;;  %v510_v27 = vpack.c.bf16 %v38_v23, %v37_v22  ;;  %v40_v29 = vld [vmem:[#allocation2 + $0x108] sm:$0xff] }
  0x19   :  { %524 = vmatprep.subr.bf16.mxu1 %v604_v0  ;;  %v39_v28 = vld [vmem:[#allocation2 + $0xf0] sm:$0xff]  ;;  %v531_v30 = vpack.c.bf16 %v130_v26, %v129_v25  ;;  %v131_v31 = vld [vmem:[#allocation2 + $0xc8] sm:$0xff]  ;;  %v132_v32 = vld [vmem:[#allocation2 + $0xe0] sm:$0xff] }
  0x1a   :  { %502 = vmatpush3.bf16.msra.mxu0 %v501_v7  ;;  %v513_v33 = vpack.c.bf16 %v40_v29, %v39_v28  ;;  %v41_v34 = vld [vmem:[#allocation2 + $0x120] sm:$0xff]  ;;  %v42_v35 = vld [vmem:[#allocation2 + $0x138] sm:$0xff]  ;;  %v534_v36 = vpack.c.bf16 %v132_v32, %v131_v31  ;;  %v134_v38 = vld [vmem:[#allocation2 + $0x110] sm:$0xff] }
  0x1b   :  { %503 = vmatprep.subr.bf16.mxu0 %v604_v0  ;;  %v133_v37 = vld [vmem:[#allocation2 + $0xf8] sm:$0xff]  ;;  %v516_v39 = vpack.c.bf16 %v42_v35, %v41_v34  ;;  %v43_v40 = vld [vmem:[#allocation2 + $0x150] sm:$0xff]  ;;  %v44_v41 = vld [vmem:[#allocation2 + $0x168] sm:$0xff] }
  0x1c   :  { %526 = vmatpush3.bf16.msra.mxu1 %v525_v18  ;;  %v537_v42 = vpack.c.bf16 %v134_v38, %v133_v37  ;;  %v135_v43 = vld [vmem:[#allocation2 + $0x128] sm:$0xff]  ;;  %v136_v44 = vld [vmem:[#allocation2 + $0x140] sm:$0xff]  ;;  %v519_v45 = vpack.c.bf16 %v44_v41, %v43_v40  ;;  %v137_v48 = vld [vmem:[#allocation2 + $0x158] sm:$0xff] }
  0x1d   :  { %527 = vmatprep.subr.bf16.mxu1 %v604_v0  ;;  %v540_v46 = vpack.c.bf16 %v136_v44, %v135_v43  ;;  %v28_v47 = vld [vmem:[%s686_s0] sm:$0xff]  ;;  %v138_v49 = vld [vmem:[#allocation2 + $0x170] sm:$0xff]  ;;  %v218_v52 = vld [vmem:[#allocation2 + $0x28] sm:$0xff] }
  0x1e   :  { %505 = vmatpush3.bf16.msra.mxu0 %v504_v14  ;;  %v543_v50 = vpack.c.bf16 %v138_v49, %v137_v48  ;;  %v217_v51 = vld [vmem:[#allocation2 + $0x10] sm:$0xff]  ;;  %v219_v53 = vld [vmem:[#allocation2 + $0x40] sm:$0xff]  ;;  %v220_v55 = vld [vmem:[#allocation2 + $0x58] sm:$0xff] }
  0x1f   :  { %506 = vmatprep.subr.bf16.mxu0 %v604_v0  ;;  %v546_v54 = vpack.c.bf16 %v218_v52, %v217_v51  ;;  %v549_v56 = vpack.c.bf16 %v220_v55, %v219_v53  ;;  %v221_v57 = vld [vmem:[#allocation2 + $0x70] sm:$0xff]  ;;  %v222_v58 = vld [vmem:[#allocation2 + $0x88] sm:$0xff]  ;;  %v223_v60 = vld [vmem:[#allocation2 + $0xa0] sm:$0xff] }
  0x20   :  { %529 = vmatpush3.bf16.msra.mxu1 %v528_v24  ;;  %v552_v59 = vpack.c.bf16 %v222_v58, %v221_v57  ;;  %v224_v61 = vld [vmem:[#allocation2 + $0xb8] sm:$0xff]  ;;  %v225_v63 = vld [vmem:[#allocation2 + $0xd0] sm:$0xff]  ;;  %v227_v3 = vld [vmem:[#allocation2 + $0x100] sm:$0xff] }
  0x21   :  { %530 = vmatprep.subr.bf16.mxu1 %v604_v0  ;;  %v555_v62 = vpack.c.bf16 %v224_v61, %v223_v60  ;;  %v228_v4 = vld [vmem:[#allocation2 + $0x118] sm:$0xff]  ;;  %v229_v6 = vld [vmem:[#allocation2 + $0x130] sm:$0xff]  ;;  %v230_v7 = vld [vmem:[#allocation2 + $0x148] sm:$0xff] }
  0x22   :  { %508 = vmatpush3.bf16.msra.mxu0 %v507_v21  ;;  %v561_v5 = vpack.c.bf16 %v228_v4, %v227_v3  ;;  %v564_v8 = vpack.c.bf16 %v230_v7, %v229_v6  ;;  %v338_v9 = vld [vmem:[%s688_s2] ss:$0 sm:$0xff]  ;;  %v232_v15 = vld [vmem:[#allocation2 + $0x178] sm:$0xff]  ;;  %v339_v17 = vld [vmem:[%s688_s2 + $0x1] ss:$0 sm:$0xff]  ;;  %v310_v21 = vlaneseq }
  0x23   :  { %509 = vmatprep.subr.bf16.mxu0 %v604_v0  ;;  %v231_v14 = vld [vmem:[#allocation2 + $0x160] sm:$0xff] }
  0x24   :  { %532 = vmatpush3.bf16.msra.mxu1 %v531_v30  ;;  %v567_v16 = vpack.c.bf16 %v232_v15, %v231_v14  ;;  %v311_v22 = vand.u32 127, %v310_v21  ;;  %v340_v23 = vld [vmem:[%s688_s2 + $0x2] ss:$0 sm:$0xff] }
  0x25   :  { %533 = vmatprep.subr.bf16.mxu1 %v604_v0 }
  0x26   :  { %511 = vmatpush3.bf16.msra.mxu0 %v510_v27  ;;  %vm312_vm1 = vcmp.lt.s32.totalorder %v311_v22, 4  ;;  %vm324_vm2 = vcmp.eq.s32.totalorder %v311_v22, 127 }
  0x27   :  { %512 = vmatprep.subr.bf16.mxu0 %v604_v0 }
  0x28   :  { %535 = vmatpush3.bf16.msra.mxu1 %v534_v36 }
  0x29   :  { %536 = vmatprep.subr.bf16.mxu1 %v604_v0 }
  0x2a   :  { %514 = vmatpush3.bf16.msra.mxu0 %v513_v33 }
  0x2b   :  { %515 = vmatprep.subr.bf16.mxu0 %v604_v0 }
  0x2c   :  { %538 = vmatpush3.bf16.msra.mxu1 %v537_v42 }
  0x2d   :  { %539 = vmatprep.subr.bf16.mxu1 %v604_v0 }
  0x2e   :  { %517 = vmatpush3.bf16.msra.mxu0 %v516_v39 }
  0x2f   :  { %518 = vmatprep.subr.bf16.mxu0 %v604_v0 }
  0x30   :  { %541 = vmatpush3.bf16.msra.mxu1 %v540_v46 }
  0x31   :  { %542 = vmatprep.subr.bf16.mxu1 %v604_v0 }
  0x32   :  { %520 = vmatpush3.bf16.msra.mxu0 %v519_v45 }
  0x33   :  { %545 = vmatprep.subr.bf16.mxu0 %v604_v0 }
  0x34   :  { %544 = vmatpush3.bf16.msra.mxu1 %v543_v50 }
  0x35   :  { %425 = vmatmul.mubr.f32.vlgmr.msra.gmra.mrb[0].mxu0 %v28_v47 }
  0x36   :  { %494 = vmatprep.mubr.msk.f32.mxu0 %vm605_vm0, %v606_v1  ;;  %547 = vmatpush3.bf16.msra.mxu0 %v546_v54  ;;  %v226_v1 = vld [vmem:[#allocation2 + $0xe8] sm:$0xff] }
  0x37   :  { %548 = vmatprep.subr.bf16.mxu0 %v604_v0  ;;  %v558_v2 = vpack.c.bf16 %v226_v1, %v225_v63 }
  0x3a   :  { %550 = vmatpush3.bf16.msra.mxu0 %v549_v56 }
  0x3b   :  { %551 = vmatprep.subr.bf16.mxu0 %v604_v0 }
  0x3e   :  { %553 = vmatpush3.bf16.msra.mxu0 %v552_v59 }
  0x3f   :  { %554 = vmatprep.subr.bf16.mxu0 %v604_v0 }
  0x42   :  { %556 = vmatpush3.bf16.msra.mxu0 %v555_v62 }
  0x43   :  { %557 = vmatprep.subr.bf16.mxu0 %v604_v0 }
  0x46   :  { %559 = vmatpush3.bf16.msra.mxu0 %v558_v2 }
  0x47   :  { %560 = vmatprep.subr.bf16.mxu0 %v604_v0 }
  0x4a   :  { %562 = vmatpush3.bf16.msra.mxu0 %v561_v5 }
  0x4b   :  { %563 = vmatprep.subr.bf16.mxu0 %v604_v0 }
  0x4e   :  { %565 = vmatpush3.bf16.msra.mxu0 %v564_v8 }
  0x4f   :  { %566 = vmatprep.subr.bf16.mxu0 %v604_v0 }
  0x52   :  { %568 = vmatpush3.bf16.msra.mxu0 %v567_v16 }
 0x108   :  { %v118_v10 = vpop.f32.mrb[0].mxu0 }
 0x109   :  { %v119_v11 = vadd.f32 %v338_v9, %v118_v10  ;;  %v426_v12 = vpop.f32.mrb[1].mxu0 }
 0x10b   :  { %v122_v13 = vmax.f32 %v119_v11, 0.0 }
 0x10d   :  { %460 = vmatmul.mubr.f32.vlgmr.msra.gmra.mrb[0].mxu1 %v122_v13 }
 0x1e0   :  { %v212_v18 = vpop.f32.mrb[0].mxu1 }
 0x1e1   :  { %v213_v19 = vadd.f32 %v339_v17, %v212_v18  ;;  %v461_v0 = vpop.f32.mrb[1].mxu1 }
 0x1e3   :  { %v216_v20 = vmax.f32 %v213_v19, 0.0 }
 0x1e5   :  { %495 = vmatmul.mubr.f32.vlgmr.msra.gmra.mrb[2].mxu0 %v216_v20 }
 0x2b8   :  { %v306_v24 = vpop.f32.mrb[2].mxu0 }
 0x2b9   :  { %v307_v25 = vadd.f32 %v340_v23, %v306_v24  ;;  %v496_v26 = vpop.f32.mrb[3].mxu0 }
 0x2bb   :  { %v313_v27 = vsel %vm312_vm1, %v307_v25, 0.0  ;;  %v325_v28 = vsel %vm324_vm2, %v307_v25, 0.0 }
 0x2bc   :  { %314 = vadd.xlane.f32.xlu0 %v313_v27 }
 0x2c0   :  { %326 = vadd.xlane.f32.xlu0 %v325_v28 }
 0x349   :  { %v315_v29 = vpop.xlane.xlu0 %314 }
 0x34a   :  { %v316_v30 = vrot.slane %v315_v29, 4 }
 0x34c   :  { %v317_v31 = vadd.f32 %v316_v30, %v315_v29 }
 0x34d   :  { %v327_v36 = vpop.xlane.xlu0 %326 }
 0x34e   :  { %v318_v32 = vrot.slane %v317_v31, 2 }
 0x350   :  { %v319_v33 = vadd.f32 %v318_v32, %v317_v31 }
 0x352   :  { %v320_v34 = vrot.slane %v319_v33, 1 }
 0x354   :  { %v321_v35 = vadd.f32 %v320_v34, %v319_v33 }
 0x356   :  { %569 = vpush %v321_v35 }
 0x387   :  { %s570_s5 = spop %569 }
 0x388   :  { %s323_s2 = smul.f32 0.03125, %s570_s5 }
 0x38a   :  { %v328_v37 = vstv %s323_s2 }
 0x38b   :  { %v329_v38 = vsub.f32 %v327_v36, %v328_v37 }
 0x38d   :  { %v330_v39 = vadd.f32 %v329_v38, %v307_v25 }
 0x38f   :  { %v331_v40 = vsel %vm312_vm1, %v330_v39, 0.0 }
 0x390   :  { %332 = vst [vmem:[%s689_s3] sm:$0xff] %v331_v40 }
 0x391   :  { %337 = vsyncpa [#allocation3], 1 }

</bundles_post_ra>
